<compile_context>
chip_gen: v7x
topology: tpu7x:2x2x1
jax: 0.10.0
libtpu: 0.0.40
codegen_flags: <defaults>
</compile_context>

<pallas_src>
import functools

import jax
import jax.numpy as jnp
from jax.experimental import pallas as pl
from jax.experimental.pallas import tpu as pltpu

H1 = 128   # hidden width of layer 1
H2 = 64    # true hidden width of layer 2
H2P = 128  # lane-padded hidden width of layer 2


def _round_up(x, m):
    return ((x + m - 1) // m) * m


def _mlp_kernel(x_ref, w1_ref, b1_ref, w2_ref, b2_ref, w3_ref, b3_ref, o_ref):
    # Layer 1 (MXU): (TM, F) @ (F, 128) -> f32 accumulate, bias + ReLU on VPU.
    h1 = jnp.dot(x_ref[...], w1_ref[...], preferred_element_type=jnp.float32)
    h1 = jnp.maximum(h1 + b1_ref[...], 0.0)

    # Layer 2 (MXU): (TM, 128) @ (128, 128 padded) -> f32, bias + ReLU.
    # Padded columns of w2/b2 are zero, so h2[:, 64:] == 0 after ReLU.
    h2 = jnp.dot(h1.astype(w2_ref.dtype), w2_ref[...],
                 preferred_element_type=jnp.float32)
    h2 = jnp.maximum(h2 + b2_ref[...], 0.0)

    # Output layer (N=1): VPU multiply + lane reduction instead of a
    # degenerate MXU matmul. Padded lanes of w3_row are zero.
    out = jnp.sum(h2 * w3_ref[...], axis=-1, keepdims=True) + b3_ref[...]
    o_ref[...] = out.astype(o_ref.dtype)


@functools.partial(jax.jit, static_argnames=("block_b", "use_bf16"))
def price_predictor_forward(x, params, *, block_b=1024, use_bf16=False):
    """x: (B, F) float32. params: dict w1,b1,w2,b2,w3,b3 (torch-transposed:
    w has shape (in, out)). Returns (B, 1) float32."""
    w1, b1 = params["w1"], params["b1"]
    w2, b2 = params["w2"], params["b2"]
    w3, b3 = params["w3"], params["b3"]

    B, F = x.shape

    # --- weight prep (done once per call; trivially small) ------------------
    # Biases as (1, out) 2-D lane-major tiles.
    b1_t = b1.reshape(1, H1).astype(jnp.float32)
    # Pad layer 2 to full 128 lanes with zeros.
    w2_p = jnp.zeros((H1, H2P), jnp.float32).at[:, :H2].set(w2)
    b2_t = jnp.zeros((1, H2P), jnp.float32).at[:, :H2].set(b2.reshape(1, H2))
    # Output weight as a zero-padded (1, 128) row for the VPU reduction.
    w3_row = jnp.zeros((1, H2P), jnp.float32).at[:, :H2].set(w3.reshape(1, H2))
    b3_t = b3.reshape(1, 1).astype(jnp.float32)

    w1_t = w1.astype(jnp.float32)
    x_t = x.astype(jnp.float32)
    if use_bf16:
        # v6e/v7x MXU fast path: bf16 operands, f32 accumulation.
        # TODO(synk): fp8 weights on v7x if accuracy budget allows.
        x_t = x_t.astype(jnp.bfloat16)
        w1_t = w1_t.astype(jnp.bfloat16)
        w2_p = w2_p.astype(jnp.bfloat16)

    # --- batch tiling --------------------------------------------------------
    # Tile must be a multiple of 8 (sublane constraint); pad B to a multiple
    # of the tile so the last grid step never touches out-of-bounds rows.
    tm = min(block_b, _round_up(B, 8))
    tm = _round_up(tm, 8)
    b_pad = _round_up(B, tm)
    if b_pad != B:
        x_t = jnp.pad(x_t, ((0, b_pad - B), (0, 0)))
    n_tiles = b_pad // tm

    const2 = lambda i: (0, 0)  # weights/biases: VMEM-resident across the grid

    cost = pl.CostEstimate(
        flops=2 * b_pad * (F * H1 + H1 * H2P + H2P),
        transcendentals=0,
        bytes_accessed=(x_t.size * x_t.dtype.itemsize
                        + w1_t.size * w1_t.dtype.itemsize
                        + w2_p.size * w2_p.dtype.itemsize
                        + (b1_t.size + b2_t.size + w3_row.size + b3_t.size) * 4
                        + b_pad * 4),
    )

    out = pl.pallas_call(
        _mlp_kernel,
        out_shape=jax.ShapeDtypeStruct((b_pad, 1), jnp.float32),
        grid=(n_tiles,),
        in_specs=[
            pl.BlockSpec((tm, F), lambda i: (i, 0)),      # x tile (pipelined)
            pl.BlockSpec((F, H1), const2),                # w1
            pl.BlockSpec((1, H1), const2),                # b1
            pl.BlockSpec((H1, H2P), const2),              # w2 (padded)
            pl.BlockSpec((1, H2P), const2),               # b2 (padded)
            pl.BlockSpec((1, H2P), const2),               # w3 row (padded)
            pl.BlockSpec((1, 1), const2),                 # b3
        ],
        out_specs=pl.BlockSpec((tm, 1), lambda i: (i, 0)),
        compiler_params=pltpu.CompilerParams(
            dimension_semantics=("parallel",),
        ),
        cost_estimate=cost,
    )(x_t, w1_t, b1_t, w2_p, b2_t, w3_row, b3_t)

    return out[:B]


def init_params(input_features, key):
    """Deterministic init mimicking torch.nn.Linear default U(-1/sqrt(fan_in), +)."""
    def linear(key, fan_in, fan_out):
        kw, kb = jax.random.split(key)
        bound = 1.0 / jnp.sqrt(jnp.float32(fan_in))
        w = jax.random.uniform(kw, (fan_in, fan_out), jnp.float32, -bound, bound)
        b = jax.random.uniform(kb, (fan_out,), jnp.float32, -bound, bound)
        return w, b

    k1, k2, k3 = jax.random.split(key, 3)
    w1, b1 = linear(k1, input_features, H1)
    w2, b2 = linear(k2, H1, H2)
    w3, b3 = linear(k3, H2, 1)
    return dict(w1=w1, b1=b1, w2=w2, b2=b2, w3=w3, b3=b3)


def reference_forward(x, params):
    h1 = jnp.maximum(x @ params["w1"] + params["b1"], 0.0)
    h2 = jnp.maximum(h1 @ params["w2"] + params["b2"], 0.0)
    return h2 @ params["w3"] + params["b3"]


if __name__ == "__main__":
    key = jax.random.PRNGKey(0)
    k_params, k_x = jax.random.split(key)

    batch = 8
    input_features = 16  # e.g. 16 tabular features for price prediction

    params = init_params(input_features, k_params)
    x = jax.random.normal(k_x, (batch, input_features), jnp.float32)

    # f32 path: must match the reference to tight tolerance.
    out = price_predictor_forward(x, params)
    out = jax.block_until_ready(out)
    ref = reference_forward(x, params)
    assert out.shape == (batch, 1), out.shape
    assert jnp.allclose(out, ref, atol=1e-5, rtol=1e-5), "mismatch vs reference"

    # Exercise the tiled path with a non-multiple batch size as well.
    x_big = jax.random.normal(k_x, (300, input_features), jnp.float32)
    out_big = jax.block_until_ready(
        price_predictor_forward(x_big, params, block_b=256))
    ref_big = reference_forward(x_big, params)
    assert out_big.shape == (300, 1), out_big.shape
    assert jnp.allclose(out_big, ref_big, atol=1e-5, rtol=1e-5), "tiled mismatch"

    print("KERNEL_OK")
</pallas_src>

<mosaic_0001>
module attributes {stable_mosaic.version = 11 : i64} {
  func.func @_mlp_kernel(%arg0: i32, %arg1: memref<8x16xf32, #tpu.memory_space<vmem>>, %arg2: memref<16x128xf32, #tpu.memory_space<vmem>>, %arg3: memref<1x128xf32, #tpu.memory_space<vmem>>, %arg4: memref<128x128xf32, #tpu.memory_space<vmem>>, %arg5: memref<1x128xf32, #tpu.memory_space<vmem>>, %arg6: memref<1x128xf32, #tpu.memory_space<vmem>>, %arg7: memref<1x1xf32, #tpu.memory_space<vmem>>, %arg8: memref<8x1xf32, #tpu.memory_space<vmem>>) attributes {dimension_semantics = [#tpu.dimension_semantics<parallel>], iteration_bounds = array<i64: 1>, scalar_prefetch = 0 : i64, scratch_operands = 0 : i64, tpu.core_type = #tpu.core_type<tc>, window_params = [{transform_indices = @transform_0, window_bounds = array<i64: 8, 16>}, {pipeline_mode = #tpu.pipeline_mode<synchronous>, transform_indices = @transform_1, window_bounds = array<i64: 16, 128>}, {pipeline_mode = #tpu.pipeline_mode<synchronous>, transform_indices = @transform_2, window_bounds = array<i64: 1, 128>}, {pipeline_mode = #tpu.pipeline_mode<synchronous>, transform_indices = @transform_3, window_bounds = array<i64: 128, 128>}, {pipeline_mode = #tpu.pipeline_mode<synchronous>, transform_indices = @transform_4, window_bounds = array<i64: 1, 128>}, {pipeline_mode = #tpu.pipeline_mode<synchronous>, transform_indices = @transform_5, window_bounds = array<i64: 1, 128>}, {pipeline_mode = #tpu.pipeline_mode<synchronous>, transform_indices = @transform_6, window_bounds = array<i64: 1, 1>}, {transform_indices = @transform_7, window_bounds = array<i64: 8, 1>}]} {
    %c0 = arith.constant 0 : index
    %c0_0 = arith.constant 0 : index
    %0 = vector.load %arg1[%c0, %c0_0] : memref<8x16xf32, #tpu.memory_space<vmem>>, vector<8x16xf32>
    %c0_1 = arith.constant 0 : index
    %c0_2 = arith.constant 0 : index
    %1 = vector.load %arg2[%c0_1, %c0_2] : memref<16x128xf32, #tpu.memory_space<vmem>>, vector<16x128xf32>
    %cst = arith.constant dense<0.000000e+00> : vector<8x128xf32>
    %2 = tpu.matmul %0, %1, %cst {dimension_numbers = #tpu.dot_dimension_numbers<[1], [0], [0], [1], [0, 0, 1, 1], [], []>} : vector<8x16xf32>, vector<16x128xf32>, vector<8x128xf32> -> vector<8x128xf32>
    %c0_3 = arith.constant 0 : index
    %c0_4 = arith.constant 0 : index
    %3 = vector.load %arg3[%c0_3, %c0_4] : memref<1x128xf32, #tpu.memory_space<vmem>>, vector<1x128xf32>
    %4 = vector.broadcast %3 : vector<1x128xf32> to vector<8x128xf32>
    %5 = arith.addf %2, %4 : vector<8x128xf32>
    %cst_5 = arith.constant 0.000000e+00 : f32
    %6 = vector.broadcast %cst_5 : f32 to vector<8x128xf32>
    %7 = arith.maximumf %5, %6 : vector<8x128xf32>
    %c0_6 = arith.constant 0 : index
    %c0_7 = arith.constant 0 : index
    %8 = vector.load %arg4[%c0_6, %c0_7] : memref<128x128xf32, #tpu.memory_space<vmem>>, vector<128x128xf32>
    %cst_8 = arith.constant dense<0.000000e+00> : vector<8x128xf32>
    %9 = tpu.matmul %7, %8, %cst_8 {dimension_numbers = #tpu.dot_dimension_numbers<[1], [0], [0], [1], [0, 0, 1, 1], [], []>} : vector<8x128xf32>, vector<128x128xf32>, vector<8x128xf32> -> vector<8x128xf32>
    %c0_9 = arith.constant 0 : index
    %c0_10 = arith.constant 0 : index
    %10 = vector.load %arg5[%c0_9, %c0_10] : memref<1x128xf32, #tpu.memory_space<vmem>>, vector<1x128xf32>
    %11 = vector.broadcast %10 : vector<1x128xf32> to vector<8x128xf32>
    %12 = arith.addf %9, %11 : vector<8x128xf32>
    %cst_11 = arith.constant 0.000000e+00 : f32
    %13 = vector.broadcast %cst_11 : f32 to vector<8x128xf32>
    %14 = arith.maximumf %12, %13 : vector<8x128xf32>
    %c0_12 = arith.constant 0 : index
    %c0_13 = arith.constant 0 : index
    %15 = vector.load %arg6[%c0_12, %c0_13] : memref<1x128xf32, #tpu.memory_space<vmem>>, vector<1x128xf32>
    %16 = vector.broadcast %15 : vector<1x128xf32> to vector<8x128xf32>
    %17 = arith.mulf %14, %16 : vector<8x128xf32>
    %cst_14 = arith.constant dense<0.000000e+00> : vector<8xf32>
    %18 = vector.multi_reduction <add>, %17, %cst_14 [1] : vector<8x128xf32> to vector<8xf32>
    %19 = vector.shape_cast %18 : vector<8xf32> to vector<8x1xf32>
    %c0_15 = arith.constant 0 : index
    %c0_16 = arith.constant 0 : index
    %20 = vector.load %arg7[%c0_15, %c0_16] : memref<1x1xf32, #tpu.memory_space<vmem>>, vector<1x1xf32>
    %21 = vector.broadcast %20 : vector<1x1xf32> to vector<8x1xf32>
    %22 = arith.addf %19, %21 : vector<8x1xf32>
    %c0_17 = arith.constant 0 : index
    %c0_18 = arith.constant 0 : index
    %23 = vector.load %arg8[%c0_17, %c0_18] : memref<8x1xf32, #tpu.memory_space<vmem>>, vector<8x1xf32>
    tpu.vector_store %arg8[%c0_17, %c0_18], %22 {strides = array<i32>} : memref<8x1xf32, #tpu.memory_space<vmem>>, vector<8x1xf32>,
    return
  }
  func.func @transform_0(%arg0: i32) -> (i32, i32) {
    %c0_i32 = arith.constant 0 : i32
    %c0_i32_0 = arith.constant 0 : i32
    return %arg0, %c0_i32 : i32, i32
  }
  func.func @transform_1(%arg0: i32) -> (i32, i32) {
    %c0_i32 = arith.constant 0 : i32
    %c0_i32_0 = arith.constant 0 : i32
    %c0_i32_1 = arith.constant 0 : i32
    return %c0_i32, %c0_i32_0 : i32, i32
  }
  func.func @transform_2(%arg0: i32) -> (i32, i32) {
    %c0_i32 = arith.constant 0 : i32
    %c0_i32_0 = arith.constant 0 : i32
    %c0_i32_1 = arith.constant 0 : i32
    return %c0_i32, %c0_i32_0 : i32, i32
  }
  func.func @transform_3(%arg0: i32) -> (i32, i32) {
    %c0_i32 = arith.constant 0 : i32
    %c0_i32_0 = arith.constant 0 : i32
    %c0_i32_1 = arith.constant 0 : i32
    return %c0_i32, %c0_i32_0 : i32, i32
  }
  func.func @transform_4(%arg0: i32) -> (i32, i32) {
    %c0_i32 = arith.constant 0 : i32
    %c0_i32_0 = arith.constant 0 : i32
    %c0_i32_1 = arith.constant 0 : i32
    return %c0_i32, %c0_i32_0 : i32, i32
  }
  func.func @transform_5(%arg0: i32) -> (i32, i32) {
    %c0_i32 = arith.constant 0 : i32
    %c0_i32_0 = arith.constant 0 : i32
    %c0_i32_1 = arith.constant 0 : i32
    return %c0_i32, %c0_i32_0 : i32, i32
  }
  func.func @transform_6(%arg0: i32) -> (i32, i32) {
    %c0_i32 = arith.constant 0 : i32
    %c0_i32_0 = arith.constant 0 : i32
    %c0_i32_1 = arith.constant 0 : i32
    return %c0_i32, %c0_i32_0 : i32, i32
  }
  func.func @transform_7(%arg0: i32) -> (i32, i32) {
    %c0_i32 = arith.constant 0 : i32
    %c0_i32_0 = arith.constant 0 : i32
    return %arg0, %c0_i32 : i32, i32
  }
}

</mosaic_0001>

<bundles_post_ra>
// kernel: price_predictor_forward.1
= control target key start
LH: loop header
LB: loop body
LE: loop exit
PB: predicated region body
PF: predicated region fallthrough
CT: control target
= control target key end

     0   :  { %v328_v0 = vmov 0.0|0.0   ;;  %vm329_vm0 = vmmov 0   ;;  %v330_v3 = vmov 0.0   ;;  %vm38_vm1 = vcmask 130048   ;;  %s443_s1 = inlined_call_operand.vmem [shape: f32[16,128], index: 1, kind: input, shape index: {}]   ;;  %s444_s3 = inlined_call_operand.vmem [shape: f32[128,128], index: 3, kind: input, shape index: {}]   ;;  %s445_s0 = inlined_call_operand.vmem [shape: f32[8,16], index: 0, kind: input, shape index: {}]   ;;  %s446_s2 = inlined_call_operand.vmem [shape: f32[1,128], index: 2, kind: input, shape index: {}]   ;;  %s447_s6 = inlined_call_operand.<no memory space> [shape: f32[1,1], index: 6, kind: input, shape index: {}]   ;;  %s448_s4 = inlined_call_operand.vmem [shape: f32[1,128], index: 4, kind: input, shape index: {}]   ;;  %s449_s5 = inlined_call_operand.vmem [shape: f32[1,128], index: 5, kind: input, shape index: {}]   ;;  %s450_s7 = inlined_call_operand.vmem [shape: f32[8,1], index: 7, kind: output, shape index: {}]  }
   0x1   :  { %298 = vmatprep.subr.bf16.mxu0 %v328_v0  ;;  %v29_v1 = vld [vmem:[%s443_s1] sm:$0xff]  ;;  %v30_v2 = vld [vmem:[%s443_s1 + $0x8] sm:$0xff]  ;;  %260 = vmatprep.mubr.msk.f32.mxu0 %vm329_vm0, %v330_v3  ;;  %v115_v7 = vld [vmem:[%s444_s3 + $0x10] sm:$0xff]  ;;  %v12_v35 = vstv %s447_s6  ;;  %vm225_vm2 = vcmask 7168  }
   0x2   :  { %v299_v4 = vpack.c.bf16 %v30_v2, %v29_v1  ;;  %301 = vmatprep.subr.bf16.mxu1 %v328_v0  ;;  %v113_v5 = vld [vmem:[%s444_s3] sm:$0xff]  ;;  %v114_v6 = vld [vmem:[%s444_s3 + $0x8] sm:$0xff]  ;;  %295 = vmatprep.mubr.msk.f32.mxu1 %vm329_vm0, %v330_v3  ;;  %v116_v9 = vld [vmem:[%s444_s3 + $0x18] sm:$0xff]  ;;  %13 = vst [vmem:[#allocation2] sm:$0x1] %v12_v35 }
   0x3   :  { %v302_v8 = vpack.c.bf16 %v114_v6, %v113_v5  ;;  %v28_v10 = vld [vmem:[%s445_s0] sm:$0xff]  ;;  %v305_v11 = vpack.c.bf16 %v116_v9, %v115_v7  ;;  %v118_v13 = vld [vmem:[%s444_s3 + $0x28] sm:$0xff]  ;;  %v119_v15 = vld [vmem:[%s444_s3 + $0x30] sm:$0xff] }
   0x4   :  { %300 = vmatpush3.bf16.msra.mxu0 %v299_v4  ;;  %v117_v12 = vld [vmem:[%s444_s3 + $0x20] sm:$0xff]  ;;  %v120_v16 = vld [vmem:[%s444_s3 + $0x38] sm:$0xff]  ;;  %v122_v19 = vld [vmem:[%s444_s3 + $0x48] sm:$0xff] }
   0x5   :  { %303 = vmatpush3.bf16.msra.mxu1 %v302_v8  ;;  %v308_v14 = vpack.c.bf16 %v118_v13, %v117_v12  ;;  %v311_v17 = vpack.c.bf16 %v120_v16, %v119_v15  ;;  %v121_v18 = vld [vmem:[%s444_s3 + $0x40] sm:$0xff]  ;;  %v123_v21 = vld [vmem:[%s444_s3 + $0x50] sm:$0xff]  ;;  %v124_v22 = vld [vmem:[%s444_s3 + $0x58] sm:$0xff] }
   0x6   :  { %304 = vmatprep.subr.bf16.mxu1 %v328_v0  ;;  %v314_v20 = vpack.c.bf16 %v122_v19, %v121_v18  ;;  %v317_v23 = vpack.c.bf16 %v124_v22, %v123_v21  ;;  %v125_v24 = vld [vmem:[%s444_s3 + $0x60] sm:$0xff]  ;;  %v126_v25 = vld [vmem:[%s444_s3 + $0x68] sm:$0xff]  ;;  %v127_v27 = vld [vmem:[%s444_s3 + $0x70] sm:$0xff] }
   0x7   :  { %261 = vmatmul.mubr.msk.f32.vlgmr.msra.gmra.mrb[0].mxu0 %vm38_vm1, %v28_v10  ;;  %v320_v26 = vpack.c.bf16 %v126_v25, %v125_v24  ;;  %v128_v28 = vld [vmem:[%s444_s3 + $0x78] sm:$0xff]  ;;  %v231_v30 = vld [vmem:[%s446_s2] ss:$0 sm:$0xff] }
   0x8   :  { %v323_v29 = vpack.c.bf16 %v128_v28, %v127_v27  ;;  %v233_v36 = vld [vmem:[%s448_s4] ss:$0 sm:$0xff] }
   0x9   :  { %306 = vmatpush3.bf16.msra.mxu1 %v305_v11  ;;  %v234_v40 = vld [vmem:[%s449_s5] ss:$0 sm:$0xff] }
   0xa   :  { %307 = vmatprep.subr.bf16.mxu1 %v328_v0  ;;  %v235_v43 = vld [vmem:[#allocation2] ss:$0 sm:$0xff] }
   0xd   :  { %309 = vmatpush3.bf16.msra.mxu1 %v308_v14 }
   0xe   :  { %310 = vmatprep.subr.bf16.mxu1 %v328_v0 }
  0x11   :  { %312 = vmatpush3.bf16.msra.mxu1 %v311_v17 }
  0x12   :  { %313 = vmatprep.subr.bf16.mxu1 %v328_v0 }
  0x15   :  { %315 = vmatpush3.bf16.msra.mxu1 %v314_v20 }
  0x16   :  { %316 = vmatprep.subr.bf16.mxu1 %v328_v0 }
  0x19   :  { %318 = vmatpush3.bf16.msra.mxu1 %v317_v23 }
  0x1a   :  { %319 = vmatprep.subr.bf16.mxu1 %v328_v0 }
  0x1d   :  { %321 = vmatpush3.bf16.msra.mxu1 %v320_v26 }
  0x1e   :  { %322 = vmatprep.subr.bf16.mxu1 %v328_v0 }
  0x21   :  { %324 = vmatpush3.bf16.msra.mxu1 %v323_v29 }
  0xda   :  { %v108_v31 = vpop.f32.mrb[0].mxu0 }
  0xdb   :  { %v109_v32 = vadd.f32 %v231_v30, %v108_v31  ;;  %v262_v33 = vpop.f32.mrb[1].mxu0 }
  0xdd   :  { %v112_v34 = vmax.f32 %v109_v32, 0.0 }
  0xdf   :  { %296 = vmatmul.mubr.f32.vlgmr.msra.gmra.mrb[0].mxu1 %v112_v34 }
 0x1b2   :  { %v202_v37 = vpop.f32.mrb[0].mxu1 }
 0x1b3   :  { %v203_v38 = vadd.f32 %v233_v36, %v202_v37  ;;  %v297_v39 = vpop.f32.mrb[1].mxu1 }
 0x1b5   :  { %v206_v41 = vmax.f32 %v203_v38, 0.0 }
 0x1b7   :  { %v214_v42 = vmul.f32 %v234_v40, %v206_v41 }
 0x1b9   :  { %215 = vadd.xlane.f32.xlu0 %v214_v42 }
 0x246   :  { %v216_v44 = vpop.xlane.xlu0 %215 }
 0x247   :  { %v224_v45 = vadd.f32 %v235_v43, %v216_v44 }
 0x249   :  { %226 = vst.msk [vmem:[%s450_s7] sm:$0xff] %vm225_vm2, %v224_v45 }

</bundles_post_ra>
